<compile_context>
chip_gen: v7x
topology: tpu7x:2x2x1
jax: 0.10.0
libtpu: 0.0.40
codegen_flags: <defaults>
</compile_context>

<pallas_src>
import jax
import jax.numpy as jnp
from jax.experimental import pallas as pl
from jax.experimental.pallas import tpu as pltpu


COMPUTE_DTYPE = jnp.bfloat16   # HBM streams; MXU accumulation stays f32


# ---------------------------------------------------------------------------
# Pallas kernel: for all d at once,
#   out[r, d, s] = sum_j W[c, r, j] * x_unf[d, j, s] * mask_norm[j, s]
# ---------------------------------------------------------------------------
def _make_kernel(D):
    def kernel(x_ref, m_ref, w_ref, o_ref):
        # x_ref : (D, A2, T)   bf16  shifted/unfolded features of one (b, c, hw-tile)
        # m_ref : (A2, T)      bf16  mask / mask_avg (reused across the c grid axis)
        # w_ref : (c, Cpg, A2) bf16  full grouped 1x1-conv weight (VMEM resident)
        # o_ref : (Cpg, D, T)  f32   cost block, already in final (r, d) row order
        ci = pl.program_id(2)
        w = w_ref[ci]                       # (Cpg, A2)
        m = m_ref[...]                      # (A2, T)
        for d in range(D):                  # static unroll over disparities
            mod = x_ref[d] * m              # VPU modulate
            o_ref[:, d, :] = jnp.dot(w, mod,                       # MXU, f32 acc
                                     preferred_element_type=jnp.float32)
    return kernel


# ---------------------------------------------------------------------------
# Host glue: reproduce rearrange + ZeroPad2d + mosaic + dilated nn.Unfold
# ---------------------------------------------------------------------------
def _prepare(x, mask, weight, angRes, mindisp, maxdisp, compute_dtype=COMPUTE_DTYPE):
    b, c, aa, h, w = x.shape
    A = angRes
    assert aa == A * A
    C_out = weight.shape[0]
    assert C_out % c == 0
    Cpg = C_out // c

    bdr = (A // 2) * maxdisp
    # 'b c (a1 a2) h w -> (b a1 a2) c h w' ; ZeroPad2d(bdr) ; mosaic rearrange
    xv = x.reshape(b, c, A, A, h, w).astype(compute_dtype)
    xpad = jnp.pad(xv, ((0, 0), (0, 0), (0, 0), (0, 0), (bdr, bdr), (bdr, bdr)))
    h_pad, w_pad = h + 2 * bdr, w + 2 * bdr
    mosaic = xpad.transpose(0, 1, 2, 4, 3, 5).reshape(b, c, A * h_pad, A * w_pad)

    bm, a2m, h_m, w_m = mask.shape
    assert bm == b and a2m == A * A
    HW = h_m * w_m
    D = maxdisp - mindisp + 1

    # dilated Unfold == static strided slicing -> x_unf (b, c, D, A2, HW)
    unf = []
    for d in range(mindisp, maxdisp + 1):
        crop = (A // 2) * (d - mindisp)
        feat = mosaic if crop == 0 else mosaic[:, :, crop:-crop, crop:-crop]
        dil_h, dil_w = h_pad - d, w_pad - d
        H_out = feat.shape[2] - dil_h * (A - 1)
        W_out = feat.shape[3] - dil_w * (A - 1)
        assert (H_out, W_out) == (h_m, w_m), "mask spatial dims must match unfold"
        pos = [feat[:, :, p * dil_h:p * dil_h + H_out, q * dil_w:q * dil_w + W_out]
               for p in range(A) for q in range(A)]
        unf.append(jnp.stack(pos, axis=2).reshape(b, c, A * A, HW))
    x_unf = jnp.stack(unf, axis=2)                       # (b, c, D, A2, HW)

    # Fold the per-pixel 1/mask_avg into the mask once (exact rewrite).
    mask_f = mask.reshape(b, A * A, HW).astype(jnp.float32)
    mask_avg = jnp.mean(mask_f, axis=1, keepdims=True)   # (b, 1, HW)
    mask_norm = (mask_f / mask_avg).astype(compute_dtype)

    wgt = weight.reshape(c, Cpg, A * A).astype(compute_dtype)  # (c, Cpg, A2)
    return x_unf, mask_norm, wgt, (D, b, c, Cpg, A * A, HW, h_m, w_m)


# ---------------------------------------------------------------------------
# Tile / VMEM sizing (generation aware)
# ---------------------------------------------------------------------------
def _round_up(v, m):
    return -(-v // m) * m


def _device_budget():
    kind = ""
    try:
        kind = jax.devices()[0].device_kind.lower()
    except Exception:
        pass
    if "v5" in kind or "v6" in kind:                  # 128 MiB physical VMEM
        return 24 * 2**20, 32768, 96 * 2**20
    return 12 * 2**20, 16384, 48 * 2**20              # v7x (64 MiB) / unknown


def _pick_tiles(HW, D, A2, Cpg, b, c):
    buf_budget, lane_cap, vmem_cap = _device_budget()
    # bytes per lane of one (x, mask, out) buffer set, with sublane padding
    a2_pad = _round_up(A2, 16)          # bf16 packs 16 sublanes per tile
    d_pad = _round_up(D, 8)             # f32 packs 8
    per_lane = D * a2_pad * 2 + a2_pad * 2 + Cpg * d_pad * 4
    cap = max(128, min(lane_cap, (buf_budget // per_lane) // 128 * 128))
    n_hw = max(1, -(-HW // cap))
    # keep >= 2 parallel grid slices so v7x megacore has work to split
    if b * c * n_hw < 2 and HW > 128:
        n_hw = 2
    hw_t = _round_up(-(-HW // n_hw), 128)
    HW_pad = n_hw * hw_t
    need = 2 * per_lane * hw_t + 4 * 2**20            # double-buffered + slack
    vmem_limit = int(min(max(need, 32 * 2**20), vmem_cap))
    return hw_t, n_hw, HW_pad, vmem_limit


# ---------------------------------------------------------------------------
# BuildCost forward (Pallas)
# ---------------------------------------------------------------------------
def build_cost(x, mask, weight, angRes, mindisp, maxdisp):
    x_unf, mask_norm, wgt, dims = _prepare(
        x, mask, weight, angRes, mindisp, maxdisp)
    D, b, c, Cpg, A2, HW, h_m, w_m = dims

    hw_t, n_hw, HW_pad, vmem_limit = _pick_tiles(HW, D, A2, Cpg, b, c)
    if HW_pad != HW:
        pad = HW_pad - HW
        x_unf = jnp.pad(x_unf, ((0, 0),) * 4 + ((0, pad),))
        mask_norm = jnp.pad(mask_norm, ((0, 0), (0, 0), (0, pad)))

    x_spec = pl.BlockSpec((None, None, D, A2, hw_t),
                          lambda bi, hi, ci: (bi, ci, 0, 0, hi))
    m_spec = pl.BlockSpec((None, A2, hw_t),
                          lambda bi, hi, ci: (bi, 0, hi))
    # whole weight as one VMEM-resident block (constant index map)
    w_spec = pl.BlockSpec((c, Cpg, A2),
                          lambda bi, hi, ci: (0, 0, 0))
    out_spec = pl.BlockSpec((None, None, Cpg, D, hw_t),
                            lambda bi, hi, ci: (bi, ci, 0, 0, hi))

    out = pl.pallas_call(
        _make_kernel(D),
        out_shape=jax.ShapeDtypeStruct((b, c, Cpg, D, HW_pad), jnp.float32),
        grid_spec=pltpu.PrefetchScalarGridSpec(
            num_scalar_prefetch=0,
            # c innermost: the mask block (depends on b, hw only) is reused
            grid=(b, n_hw, c),
            in_specs=[x_spec, m_spec, w_spec],
            out_specs=out_spec),
        compiler_params=pltpu.CompilerParams(
            dimension_semantics=("parallel", "parallel", "arbitrary"),
            vmem_limit_bytes=vmem_limit),
    )(x_unf, mask_norm, wgt)

    if HW_pad != HW:
        out = out[..., :HW]
    # (b, c, Cpg, D, HW) -> (b, c*Cpg, D, h, w) is a pure reshape (rows were
    # produced in (Cpg, D) order inside the kernel).
    return out.reshape(b, c * Cpg, D, h_m, w_m)


# Pure-JAX reference (compute_dtype=bf16 matches the kernel's quantization;
# compute_dtype=f32 is the "true" full-precision pipeline).
def build_cost_ref(x, mask, weight, angRes, mindisp, maxdisp,
                   compute_dtype=COMPUTE_DTYPE):
    x_unf, mask_norm, wgt, dims = _prepare(
        x, mask, weight, angRes, mindisp, maxdisp, compute_dtype)
    D, b, c, Cpg, A2, HW, h_m, w_m = dims
    mod = (x_unf * mask_norm[:, None, None, :, :]).astype(compute_dtype)
    out = jnp.einsum('crj,bcdjs->bcrds', wgt, mod,
                     preferred_element_type=jnp.float32)   # (b, c, Cpg, D, HW)
    return out.reshape(b, c * Cpg, D, h_m, w_m)


if __name__ == "__main__":
    angRes, mindisp, maxdisp = 3, -1, 1
    b, c_in, c_out, h, w = 2, 2, 4, 16, 16       # HW = 256 (already lane-dense)

    key = jax.random.PRNGKey(0)
    k1, k2, k3 = jax.random.split(key, 3)
    # x: (b, channel_in, angRes^2, h, w)
    x = jax.random.normal(k1, (b, c_in, angRes * angRes, h, w), jnp.float32)
    # mask: (b, angRes^2, h, w), strictly positive (it feeds mask_avg division)
    mask = jax.random.uniform(k2, (b, angRes * angRes, h, w), jnp.float32,
                              minval=0.5, maxval=1.5)
    # grouped 1x1 conv weights: (channel_out, angRes^2), bias=False
    weight = 0.1 * jax.random.normal(k3, (c_out, angRes * angRes), jnp.float32)

    fn = jax.jit(build_cost, static_argnums=(3, 4, 5))
    cost = jax.block_until_ready(fn(x, mask, weight, angRes, mindisp, maxdisp))

    D = maxdisp - mindisp + 1
    assert cost.shape == (b, c_out, D, h, w), cost.shape

    # Tight check vs. the same bf16-quantized pipeline.
    ref_bf16 = build_cost_ref(x, mask, weight, angRes, mindisp, maxdisp)
    err_bf16 = float(jnp.max(jnp.abs(cost - ref_bf16)))
    assert jnp.allclose(cost, ref_bf16, rtol=1e-3, atol=1e-3), err_bf16

    # Loose check vs. the full-f32 pipeline (catches gross bf16 deviation).
    ref_f32 = build_cost_ref(x, mask, weight, angRes, mindisp, maxdisp,
                             compute_dtype=jnp.float32)
    err_f32 = float(jnp.max(jnp.abs(cost - ref_f32)))
    assert jnp.allclose(cost, ref_f32, rtol=3e-2, atol=3e-2), err_f32

    print("KERNEL_OK")
</pallas_src>

<mosaic_0001>
module attributes {stable_mosaic.version = 11 : i64} {
  func.func @kernel(%arg0: i32, %arg1: i32, %arg2: i32, %arg3: memref<1x1x3x9x256xbf16, #tpu.memory_space<vmem>>, %arg4: memref<1x9x256xbf16, #tpu.memory_space<vmem>>, %arg5: memref<2x2x9xbf16, #tpu.memory_space<vmem>>, %arg6: memref<1x1x2x3x256xf32, #tpu.memory_space<vmem>>) attributes {dimension_semantics = [#tpu.dimension_semantics<parallel>, #tpu.dimension_semantics<parallel>, #tpu.dimension_semantics<arbitrary>], iteration_bounds = array<i64: 2, 1, 2>, scalar_prefetch = 0 : i64, scratch_operands = 0 : i64, tpu.core_type = #tpu.core_type<tc>, window_params = [{transform_indices = @transform_0, window_bounds = array<i64: 1, 1, 3, 9, 256>}, {transform_indices = @transform_1, window_bounds = array<i64: 1, 9, 256>}, {pipeline_mode = #tpu.pipeline_mode<synchronous>, transform_indices = @transform_2, window_bounds = array<i64: 2, 2, 9>}, {transform_indices = @transform_3, window_bounds = array<i64: 1, 1, 2, 3, 256>}]} {
    %0 = arith.index_cast %arg2 : i32 to index
    %c0 = arith.constant 0 : index
    %c0_0 = arith.constant 0 : index
    %1 = vector.load %arg5[%0, %c0, %c0_0] : memref<2x2x9xbf16, #tpu.memory_space<vmem>>, vector<1x2x9xbf16>
    %2 = vector.shape_cast %1 : vector<1x2x9xbf16> to vector<2x9xbf16>
    %c0_1 = arith.constant 0 : index
    %c0_2 = arith.constant 0 : index
    %c0_3 = arith.constant 0 : index
    %3 = vector.load %arg4[%c0_1, %c0_2, %c0_3] : memref<1x9x256xbf16, #tpu.memory_space<vmem>>, vector<1x9x256xbf16>
    %4 = vector.shape_cast %3 : vector<1x9x256xbf16> to vector<9x256xbf16>
    %c0_4 = arith.constant 0 : index
    %c0_5 = arith.constant 0 : index
    %c0_6 = arith.constant 0 : index
    %c0_7 = arith.constant 0 : index
    %c0_8 = arith.constant 0 : index
    %5 = vector.load %arg3[%c0_4, %c0_5, %c0_6, %c0_7, %c0_8] : memref<1x1x3x9x256xbf16, #tpu.memory_space<vmem>>, vector<1x1x1x9x256xbf16>
    %6 = vector.shape_cast %5 : vector<1x1x1x9x256xbf16> to vector<9x256xbf16>
    %7 = arith.mulf %6, %4 : vector<9x256xbf16>
    %cst = arith.constant dense<0.000000e+00> : vector<2x256xf32>
    %8 = tpu.matmul %2, %7, %cst {dimension_numbers = #tpu.dot_dimension_numbers<[1], [0], [0], [1], [0, 0, 1, 1], [], []>} : vector<2x9xbf16>, vector<9x256xbf16>, vector<2x256xf32> -> vector<2x256xf32>
    %c0_9 = arith.constant 0 : index
    %c0_10 = arith.constant 0 : index
    %c0_11 = arith.constant 0 : index
    %c0_12 = arith.constant 0 : index
    %c0_13 = arith.constant 0 : index
    %9 = vector.load %arg6[%c0_9, %c0_10, %c0_11, %c0_12, %c0_13] : memref<1x1x2x3x256xf32, #tpu.memory_space<vmem>>, vector<1x1x2x1x256xf32>
    %10 = vector.shape_cast %9 : vector<1x1x2x1x256xf32> to vector<2x256xf32>
    %11 = vector.shape_cast %8 : vector<2x256xf32> to vector<1x1x2x1x256xf32>
    tpu.vector_store %arg6[%c0_9, %c0_10, %c0_11, %c0_12, %c0_13], %11 {strides = array<i32>} : memref<1x1x2x3x256xf32, #tpu.memory_space<vmem>>, vector<1x1x2x1x256xf32>,
    %c0_14 = arith.constant 0 : index
    %c0_15 = arith.constant 0 : index
    %c1 = arith.constant 1 : index
    %c0_16 = arith.constant 0 : index
    %c0_17 = arith.constant 0 : index
    %12 = vector.load %arg3[%c0_14, %c0_15, %c1, %c0_16, %c0_17] : memref<1x1x3x9x256xbf16, #tpu.memory_space<vmem>>, vector<1x1x1x9x256xbf16>
    %13 = vector.shape_cast %12 : vector<1x1x1x9x256xbf16> to vector<9x256xbf16>
    %14 = arith.mulf %13, %4 : vector<9x256xbf16>
    %cst_18 = arith.constant dense<0.000000e+00> : vector<2x256xf32>
    %15 = tpu.matmul %2, %14, %cst_18 {dimension_numbers = #tpu.dot_dimension_numbers<[1], [0], [0], [1], [0, 0, 1, 1], [], []>} : vector<2x9xbf16>, vector<9x256xbf16>, vector<2x256xf32> -> vector<2x256xf32>
    %c0_19 = arith.constant 0 : index
    %c0_20 = arith.constant 0 : index
    %c0_21 = arith.constant 0 : index
    %c1_22 = arith.constant 1 : index
    %c0_23 = arith.constant 0 : index
    %16 = vector.load %arg6[%c0_19, %c0_20, %c0_21, %c1_22, %c0_23] : memref<1x1x2x3x256xf32, #tpu.memory_space<vmem>>, vector<1x1x2x1x256xf32>
    %17 = vector.shape_cast %16 : vector<1x1x2x1x256xf32> to vector<2x256xf32>
    %18 = vector.shape_cast %15 : vector<2x256xf32> to vector<1x1x2x1x256xf32>
    tpu.vector_store %arg6[%c0_19, %c0_20, %c0_21, %c1_22, %c0_23], %18 {strides = array<i32>} : memref<1x1x2x3x256xf32, #tpu.memory_space<vmem>>, vector<1x1x2x1x256xf32>,
    %c0_24 = arith.constant 0 : index
    %c0_25 = arith.constant 0 : index
    %c2 = arith.constant 2 : index
    %c0_26 = arith.constant 0 : index
    %c0_27 = arith.constant 0 : index
    %19 = vector.load %arg3[%c0_24, %c0_25, %c2, %c0_26, %c0_27] : memref<1x1x3x9x256xbf16, #tpu.memory_space<vmem>>, vector<1x1x1x9x256xbf16>
    %20 = vector.shape_cast %19 : vector<1x1x1x9x256xbf16> to vector<9x256xbf16>
    %21 = arith.mulf %20, %4 : vector<9x256xbf16>
    %cst_28 = arith.constant dense<0.000000e+00> : vector<2x256xf32>
    %22 = tpu.matmul %2, %21, %cst_28 {dimension_numbers = #tpu.dot_dimension_numbers<[1], [0], [0], [1], [0, 0, 1, 1], [], []>} : vector<2x9xbf16>, vector<9x256xbf16>, vector<2x256xf32> -> vector<2x256xf32>
    %c0_29 = arith.constant 0 : index
    %c0_30 = arith.constant 0 : index
    %c0_31 = arith.constant 0 : index
    %c2_32 = arith.constant 2 : index
    %c0_33 = arith.constant 0 : index
    %23 = vector.load %arg6[%c0_29, %c0_30, %c0_31, %c2_32, %c0_33] : memref<1x1x2x3x256xf32, #tpu.memory_space<vmem>>, vector<1x1x2x1x256xf32>
    %24 = vector.shape_cast %23 : vector<1x1x2x1x256xf32> to vector<2x256xf32>
    %25 = vector.shape_cast %22 : vector<2x256xf32> to vector<1x1x2x1x256xf32>
    tpu.vector_store %arg6[%c0_29, %c0_30, %c0_31, %c2_32, %c0_33], %25 {strides = array<i32>} : memref<1x1x2x3x256xf32, #tpu.memory_space<vmem>>, vector<1x1x2x1x256xf32>,
    return
  }
  func.func @transform_0(%arg0: i32, %arg1: i32, %arg2: i32) -> (i32, i32, i32, i32, i32) {
    %c0_i32 = arith.constant 0 : i32
    %c0_i32_0 = arith.constant 0 : i32
    %c0_i32_1 = arith.constant 0 : i32
    return %arg0, %arg2, %c0_i32, %c0_i32_0, %arg1 : i32, i32, i32, i32, i32
  }
  func.func @transform_1(%arg0: i32, %arg1: i32, %arg2: i32) -> (i32, i32, i32) {
    %c0_i32 = arith.constant 0 : i32
    %c0_i32_0 = arith.constant 0 : i32
    return %arg0, %c0_i32, %arg1 : i32, i32, i32
  }
  func.func @transform_2(%arg0: i32, %arg1: i32, %arg2: i32) -> (i32, i32, i32) {
    %c0_i32 = arith.constant 0 : i32
    %c0_i32_0 = arith.constant 0 : i32
    %c0_i32_1 = arith.constant 0 : i32
    %c0_i32_2 = arith.constant 0 : i32
    return %c0_i32, %c0_i32_0, %c0_i32_1 : i32, i32, i32
  }
  func.func @transform_3(%arg0: i32, %arg1: i32, %arg2: i32) -> (i32, i32, i32, i32, i32) {
    %c0_i32 = arith.constant 0 : i32
    %c0_i32_0 = arith.constant 0 : i32
    %c0_i32_1 = arith.constant 0 : i32
    return %arg0, %arg2, %c0_i32, %c0_i32_0, %arg1 : i32, i32, i32, i32, i32
  }
}

</mosaic_0001>

<bundles_post_ra>
// kernel: build_cost.1
= control target key start
LH: loop header
LB: loop body
LE: loop exit
PB: predicated region body
PF: predicated region fallthrough
CT: control target
= control target key end

     0   :  { %s839_s12 = smov 0   ;;  %s841_s13 = smov 0   ;;  %s920_s0 = inlined_call_operand.vmem [shape: bf16[2,2,3,9,256], index: 0, kind: input, shape index: {}]   ;;  %s921_s1 = inlined_call_operand.vmem [shape: bf16[2,9,256], index: 1, kind: input, shape index: {}]   ;;  %s922_s2 = inlined_call_operand.vmem [shape: bf16[2,2,9], index: 2, kind: input, shape index: {}]   ;;  %s923_s3 = inlined_call_operand.vmem [shape: f32[2,2,2,3,256], index: 3, kind: output, shape index: {}]  }
   0x1   :  { %s843_s14 = smov 0   ;;  %s845_s15 = smov 0  }
   0x2   :  { %s847_s16 = smov 0  }
   0x3 LB: > { %s25_s17 = sadd.s32 1, %s806_s14  ;;  %s32_s18 = sadd.s32 1, %s810_s15  ;;  %s814_s16 = sphi %s847_s16, %s13_s16   ;;  %s810_s15 = sphi %s845_s15, %s929_s15   ;;  %s806_s14 = sphi %s843_s14, %s928_s14   ;;  %s802_s13 = sphi %s841_s13, %s927_s13   ;;  %s798_s12 = sphi %s839_s12, %s926_s12  }
   0x4   : > { %p26_p0 = scmp.ge.s32.totalorder %s25_s17, 2  ;;  %p703_p1 = scmp.ge.s32.totalorder %s814_s16, 1 }
   0x5   : > { %p190_p2 = scmp.lt.s32.totalorder %s814_s16, 5 }
   0x6   : > { %s931_s17 = smov (%p26_p0, %s25_s17), 0  ;;  %s933_s18 = smov (!%p26_p0, %s32_s18), %s810_s15 }
   0x7   : > { %p191_p3 = pnand %p703_p1, %p190_p2  ;;  %p34_p4 = scmp.ge.s32.totalorder %s933_s18, 2 }
   0x8   : > { %p240_p5 = scmp.lt.s32.totalorder (!%p191_p3), %s802_s13, 1  ;;  %p242_p6 = scmp.lt.s32.totalorder (!%p191_p3), %s798_s12, 1  ;;  %v816_v0 = vmov (!%p191_p3), 0   ;;  %vm298_vm0 = vcmask (!%p191_p3), 1043456   ;;  %vm299_vm1 = vcmask (!%p191_p3), 1044480   ;;  %v817_v3 = vmov (!%p191_p3), 65535  }
   0x9   : > { %s935_s18 = smov (%p34_p4, %s933_s18), 0  ;;  %194 = sbr.rel (%p191_p3) target bundleno = 265 (0x109), region = 32 }
   0xa   : > { %340 = vmatprep.mubr.bf16.mxu0 (!%p191_p3), %v816_v0  ;;  %434 = vmatprep.mubr.bf16.mxu1 (!%p191_p3), %v816_v0  ;;  %v300_v4 = vsel (!%p191_p3), %vm298_vm0, 4294967295, %v817_v3  ;;  %s278_s9 = scalar_lea.vmem (!%p191_p3), %s922_s2, %s798_s12  ;;  %vm294_vm2 = vcmask (!%p191_p3), 72704   ;;  %v818_v31 = vmov (!%p191_p3), 1966171168   ;;  %v355_v33 = vlaneseq (!%p191_p3) }
   0xb   : > { %v301_v14 = vsel (!%p191_p3), %vm299_vm1, %v300_v4, 0  ;;  %v279_v29 = vld [vmem:[%s278_s9] sm:$0x1] (!%p191_p3)  ;;  %v353_v32 = vunpack.c.l.s4 (!%p191_p3), %v818_v31 }
   0xc   : > { %v356_v35 = vshrl.u32 (!%p191_p3), %v355_v33, 7  ;;  %vm889_vm3 = vcmp.lt.s32.totalorder (!%p191_p3), %v355_v33, 256 }
   0xd   : > { %v354_v34 = vunpack.c.0.s8 (!%p191_p3), %v353_v32 }
   0xf   : > { %v357_v37 = vsub.s32 (!%p191_p3), %v354_v34, %v356_v35 }
  0x10   : > { %s937_s13 = smov (!%p240_p5, %s802_s13), 1 }
  0x11   : > { %s243_s19 = scalar_select %p242_p6, %s798_s12, 1 }
  0x12   : > { %s732_s20 = smul.u32 24, %s937_s13  ;;  %s730_s21 = sshll.u32 %s937_s13, 4 }
  0x13   : > { %s731_s22 = smul.u32 12, %s243_s19  ;;  %s261_s25 = scalar_lea.vmem %s921_s1, %s730_s21 }
  0x14   : > { %s707_s26 = sshll.u32 %s243_s19, 2  ;;  %s708_s27 = sshll.u32 %s937_s13, 3  ;;  %v280_v1 = vld [vmem:[%s261_s25] sm:$0xff]  ;;  %v281_v2 = vld [vmem:[%s261_s25 + $0x8] sm:$0x11] }
  0x15   : > { %s249_s28 = sadd.s32 %s732_s20, %s731_s22  ;;  %s876_s29 = sadd.s32 %s708_s27, %s707_s26 }
  0x16   : > { %s704_s30 = sshll.u32 %s249_s28, 2  ;;  %s709_s10 = sshll.u32 %s876_s29, 2 }
  0x17   : > { %s251_s6 = scalar_lea.vmem %s920_s0, %s704_s30  ;;  %s275_s13 = scalar_lea.vmem %s923_s3, %s709_s10 }
  0x18   : > { %v282_v5 = vld [vmem:[%s251_s6] sm:$0xff]  ;;  %v283_v6 = vld [vmem:[%s251_s6 + $0x8] sm:$0x11]  ;;  %v714_v12 = vld [vmem:[%s251_s6 + $0x10] sm:$0xff] }
  0x19   : > { %v721_v7 = vld [vmem:[%s251_s6 + $0x20] sm:$0xff]  ;;  %v284_v8 = vmul.bf16 %v282_v5, %v280_v1  ;;  %v285_v9 = vmul.bf16 %v283_v6, %v281_v2  ;;  %v722_v10 = vld [vmem:[%s251_s6 + $0x28] sm:$0x11]  ;;  %v715_v13 = vld [vmem:[%s251_s6 + $0x18] sm:$0x11]  ;;  %v386_v16 = vmul.bf16 %v714_v12, %v280_v1 }
  0x1a   : > { %v477_v11 = vmul.bf16 %v721_v7, %v280_v1  ;;  %v478_v15 = vmul.bf16 %v722_v10, %v281_v2  ;;  %v387_v17 = vmul.bf16 %v715_v13, %v281_v2 }
  0x1b   : > { %v711_v18 = vcombine.high %v284_v8, %v285_v9  ;;  %v710_v19 = vcombine.low %v284_v8, %v285_v9 }
  0x1c   : > { %v724_v20 = vcombine.high %v477_v11, %v478_v15  ;;  %v723_v21 = vcombine.low %v477_v11, %v478_v15  ;;  %v717_v22 = vcombine.high %v386_v16, %v387_v17  ;;  %v716_v23 = vcombine.low %v386_v16, %v387_v17 }
  0x1d   : > { %v306_v24 = vand.u32 %v711_v18, %v301_v14  ;;  %v303_v25 = vand.u32 %v710_v19, %v301_v14 }
  0x1e   : > { %v491_v26 = vand.u32 %v724_v20, %v301_v14  ;;  %v400_v27 = vand.u32 %v717_v22, %v301_v14  ;;  %v397_v28 = vand.u32 %v716_v23, %v301_v14  ;;  %v488_v30 = vand.u32 %v723_v21, %v301_v14 }
  0x1f   : > { %308 = vmatprep.subr.bf16.mxu0 %v306_v24 }
  0x20   : > { %309 = vmatpush1.bf16.msra.mxu0 %v303_v25  ;;  %402 = vmatprep.subr.bf16.mxu1 %v400_v27 }
  0x21   : > { %493 = vmatprep.subr.bf16.mxu0 %v491_v26  ;;  %403 = vmatpush1.bf16.msra.mxu1 %v397_v28 }
  0x23   : > { %712 = vmatmul.mubr.msk.bf16.vlgmr.msra.gmra.mrb[0].mxu0 %vm294_vm2, %v279_v29 }
  0x24   : > { %494 = vmatpush1.bf16.msra.mxu0 %v488_v30  ;;  %718 = vmatmul.mubr.msk.bf16.vlgmr.msra.gmra.mrb[0].mxu1 %vm294_vm2, %v279_v29 }
  0x25   : > { %525 = vmatprep.mubr.bf16.mxu0 %v816_v0 }
  0x2b   : > { %725 = vmatmul.mubr.msk.bf16.vlgmr.msra.gmra.mrb[4].mxu0 %vm294_vm2, %v279_v29 }
  0xf6   : > { %v342_v36 = vpop.f32.mrb[0].mxu0 }
  0xf7   : > { %v344_v38 = vpop.f32.mrb[1].mxu0  ;;  %v436_v39 = vpop.f32.mrb[0].mxu1 }
  0xf8   : > { %v351_v40 = vcombine.low %v342_v36, %v344_v38  ;;  %v346_v41 = vpop.f32.mrb[2].mxu0  ;;  %v438_v42 = vpop.f32.mrb[1].mxu1 }
  0xf9   : > { %v347_v43 = vpop.f32.mrb[3].mxu0  ;;  %v445_v44 = vcombine.low %v436_v39, %v438_v42  ;;  %v440_v45 = vpop.f32.mrb[2].mxu1 }
  0xfa   : > { %v358_v46 = vrot.slane %v351_v40, %v357_v37  ;;  %v441_v47 = vpop.f32.mrb[3].mxu1 }
  0xfb   : > { %v452_v49 = vrot.slane %v445_v44, %v357_v37 }
  0xfc   : > { %v359_v50 = vcombine.high %v358_v46, %v358_v46  ;;  %v366_v51 = vrot.slane %v358_v46, %v357_v37 }
  0xfd   : > { %v453_v52 = vcombine.high %v452_v49, %v452_v49  ;;  %v460_v53 = vrot.slane %v452_v49, %v357_v37 }
  0xfe   : > { %v373_v54 = vrot.slane %v359_v50, %v357_v37  ;;  %380 = vst.msk [vmem:[%s275_s13] ss:$4 sm:$0x3] %vm889_vm3, %v366_v51  ;;  %v527_v55 = vpop.f32.mrb[4].mxu0 }
  0xff   : > { %v467_v56 = vrot.slane %v453_v52, %v357_v37  ;;  %719 = vst.msk [vmem:[%s275_s13 + $0x1] ss:$4 sm:$0x3] %vm889_vm3, %v460_v53  ;;  %v529_v57 = vpop.f32.mrb[5].mxu0 }
 0x100   : > { %713 = vst.msk [vmem:[%s275_s13 + $0x8] ss:$4 sm:$0x3] %vm889_vm3, %v373_v54  ;;  %v536_v58 = vcombine.low %v527_v55, %v529_v57  ;;  %v531_v59 = vpop.f32.mrb[6].mxu0 }
 0x101   : > { %720 = vst.msk [vmem:[%s275_s13 + $0x9] ss:$4 sm:$0x3] %vm889_vm3, %v467_v56  ;;  %v532_v60 = vpop.f32.mrb[7].mxu0 }
 0x102   : > { %v543_v61 = vrot.slane %v536_v58, %v357_v37 }
 0x104   : > { %v544_v62 = vcombine.high %v543_v61, %v543_v61  ;;  %v551_v63 = vrot.slane %v543_v61, %v357_v37 }
 0x106   : > { %v558_v0 = vrot.slane %v544_v62, %v357_v37  ;;  %726 = vst.msk [vmem:[%s275_s13 + $0x2] ss:$4 sm:$0x3] %vm889_vm3, %v551_v63 }
 0x108   : > { %727 = vst.msk [vmem:[%s275_s13 + $0xa] ss:$4 sm:$0x3] %vm889_vm3, %v558_v0 }
 0x109 PF: > { %s13_s16 = sadd.s32 1, %s814_s16   ;;  %s926_s12 = smov %s806_s14 }
 0x10a   : > { %p10_p7 = scmp.ge.s32.totalorder %s13_s16, 6   ;;  %s927_s13 = smov %s810_s15 }
 0x10b   : > { %s928_s14 = smov %s931_s17  ;;  %s929_s15 = smov %s935_s18 }
 0x10c   :  { %12 = sbr.rel (!%p10_p7) target bundleno = 3 (0x3), region = 73 }

</bundles_post_ra>
